<compile_context>
chip_gen: v5e
topology: v5e:2x2
jax: 0.10.0
libtpu: 0.0.40
codegen_flags: <defaults>
</compile_context>

<pallas_src>
import jax
import jax.numpy as jnp
from jax.experimental import pallas as pl
from jax.experimental.pallas import tpu as pltpu


# --------------------------------------------------------------------------
# Model hyper-parameters (small, consistent with PPOActor.__init__)
# --------------------------------------------------------------------------
STATE_DIM = 16
ACTION_DIM = 4
SHARED_HIDDEN = [32, 32]          # shared_hidden_layer_sizes
MEAN_HIDDEN = [32]                # mean_hidden_layer_sizes
VAR_HIDDEN = [32]                 # var_hidden_layer_sizes
HIDDEN_ACTIVATION = "relu"        # hidden_layer_activation
BATCH = 8

TRUNK_OUT = SHARED_HIDDEN[-1]                       # 32
HEADS_HIDDEN = MEAN_HIDDEN[-1] + VAR_HIDDEN[-1]     # 64 (mean | var hidden)
OUT_WIDTH = 2 * ACTION_DIM                          # 8  (mean | var outputs)
PACK_COLS = 64                                      # widest packed row


def _round_up(x, m):
    return (x + m - 1) // m * m


# Row offsets inside the single packed parameter buffer.  Weights are stored
# in torch layout (out_features, in_features); biases as (out_features, 1)
# columns.  Every offset is a multiple of 8 (sublane-aligned zero-cost views).
R_WS0 = 0                                               # ws0: [32, 16]
R_WS1 = _round_up(R_WS0 + SHARED_HIDDEN[0], 8)          # ws1: [32, 32]   -> 32
R_WH = _round_up(R_WS1 + SHARED_HIDDEN[1], 8)           # W_heads: [64,32]-> 64
R_WO = _round_up(R_WH + HEADS_HIDDEN, 8)                # W_out:  [8, 64] -> 128
R_BS0 = _round_up(R_WO + OUT_WIDTH, 8)                  # bs0: [32, 1]    -> 136
R_BS1 = _round_up(R_BS0 + SHARED_HIDDEN[0], 8)          # bs1: [32, 1]    -> 168
R_BH = _round_up(R_BS1 + SHARED_HIDDEN[1], 8)           # b_heads: [64,1] -> 200
R_BO = _round_up(R_BH + HEADS_HIDDEN, 8)                # b_out: [8, 1]   -> 264
PACK_ROWS = _round_up(R_BO + OUT_WIDTH, 8)              # 272


def _hidden_act(z):
    if HIDDEN_ACTIVATION == "relu":
        return jnp.maximum(z, 0.0)
    if HIDDEN_ACTIVATION == "tanh":
        return jnp.tanh(z)
    raise ValueError(HIDDEN_ACTIVATION)


# --------------------------------------------------------------------------
# Pallas kernel: whole fused forward pass (4 matmuls + activations) in VMEM,
# feature-major: activations are [features, batch_block].
# --------------------------------------------------------------------------
def ppo_actor_kernel(xt_ref, p_ref, out_ref):
    xt = xt_ref[...]                                         # [16, block_b]

    # Static (zero-cost, 8-aligned) unpacking of the packed parameter buffer.
    ws0 = p_ref[R_WS0:R_WS0 + SHARED_HIDDEN[0], 0:STATE_DIM]         # [32,16]
    ws1 = p_ref[R_WS1:R_WS1 + SHARED_HIDDEN[1], 0:SHARED_HIDDEN[0]]  # [32,32]
    wh = p_ref[R_WH:R_WH + HEADS_HIDDEN, 0:TRUNK_OUT]                # [64,32]
    wo = p_ref[R_WO:R_WO + OUT_WIDTH, 0:HEADS_HIDDEN]                # [ 8,64]
    bs0 = p_ref[R_BS0:R_BS0 + SHARED_HIDDEN[0], 0:1]                 # [32, 1]
    bs1 = p_ref[R_BS1:R_BS1 + SHARED_HIDDEN[1], 0:1]                 # [32, 1]
    bh = p_ref[R_BH:R_BH + HEADS_HIDDEN, 0:1]                        # [64, 1]
    bo = p_ref[R_BO:R_BO + OUT_WIDTH, 0:1]                           # [ 8, 1]

    # ----- shared trunk (hidden activation, include_top=False) -----
    h = _hidden_act(jnp.dot(ws0, xt, preferred_element_type=jnp.float32) + bs0)
    h = _hidden_act(jnp.dot(ws1, h, preferred_element_type=jnp.float32) + bs1)

    # ----- both head hidden layers fused: [64, B] = [mean_hidden ; var_hidden]
    u = _hidden_act(jnp.dot(wh, h, preferred_element_type=jnp.float32) + bh)

    # ----- both output layers fused via block-diagonal weight: [8, B] -----
    z = jnp.dot(wo, u, preferred_element_type=jnp.float32) + bo

    # rows [0, A) -> tanh (mean head); rows [A, 2A) -> sigmoid (var head),
    # via sigmoid(z) = 0.5 * (1 + tanh(z / 2)): a single EUP transcendental
    # over the whole block; the mask / scale run on the VPU.
    row = jax.lax.broadcasted_iota(jnp.int32, z.shape, dimension=0)
    is_mean = row < ACTION_DIM
    t = jnp.tanh(jnp.where(is_mean, z, 0.5 * z))
    out_ref[...] = jnp.where(is_mean, t, 0.5 * t + 0.5)


# --------------------------------------------------------------------------
# Parameter packing (done once at init time, NOT per forward call).
# --------------------------------------------------------------------------
def pack_params(params):
    (ws0, bs0), (ws1, bs1), (wm0, bm0), (wm1, bm1), (wv0, bv0), (wv1, bv1) = params

    # Fused head-hidden weight/bias (rows 0:32 mean, 32:64 var).
    w_heads = jnp.concatenate([wm0.T, wv0.T], axis=0)        # [64, 32]
    b_heads = jnp.concatenate([bm0, bv0], axis=1).T          # [64, 1]

    # Fused output weight (block diagonal) and bias.
    w_out = jnp.zeros((OUT_WIDTH, HEADS_HIDDEN), jnp.float32)
    w_out = w_out.at[:ACTION_DIM, :MEAN_HIDDEN[-1]].set(wm1.T)
    w_out = w_out.at[ACTION_DIM:, MEAN_HIDDEN[-1]:].set(wv1.T)
    b_out = jnp.concatenate([bm1, bv1], axis=1).T            # [8, 1]

    buf = jnp.zeros((PACK_ROWS, PACK_COLS), jnp.float32)

    def put(b, row, a):
        a = jnp.asarray(a, jnp.float32)
        return b.at[row:row + a.shape[0], :a.shape[1]].set(a)

    buf = put(buf, R_WS0, ws0.T)          # torch layout (out, in)
    buf = put(buf, R_WS1, ws1.T)
    buf = put(buf, R_WH, w_heads)
    buf = put(buf, R_WO, w_out)
    buf = put(buf, R_BS0, bs0.T)          # biases as (out, 1) columns
    buf = put(buf, R_BS1, bs1.T)
    buf = put(buf, R_BH, b_heads)
    buf = put(buf, R_BO, b_out)
    return buf


# --------------------------------------------------------------------------
# Generation-aware batch blocking.
# --------------------------------------------------------------------------
_MAX_BLOCK_B = 2048


def _num_tensorcores() -> int:
    try:
        info = pltpu.get_tpu_info()
        for attr in ("num_tensorcores", "tensorcores_per_chip", "num_cores"):
            v = getattr(info, attr, None)
            if isinstance(v, int) and v > 0:
                return v
    except Exception:
        pass
    try:
        kind = jax.devices()[0].device_kind.lower()
        return 2 if "v7" in kind else 1
    except Exception:
        return 1


def _choose_block_b(b_pad: int, n_tc: int) -> int:
    # 1-TC chips (v5e/v6e): one whole-batch block whenever it fits (grid is a
    # serial loop there; extra steps are pure per-step overhead).
    # v7x: at least 2 lane-aligned blocks so both TensorCores get work.
    if b_pad <= _MAX_BLOCK_B and (n_tc < 2 or b_pad < 256):
        return b_pad
    if n_tc >= 2:
        blk = _round_up(pl.cdiv(b_pad, n_tc), 128)
    else:
        blk = _MAX_BLOCK_B
    return max(128, min(blk, _MAX_BLOCK_B))


# --------------------------------------------------------------------------
# Wrapper.  Intended to be wrapped in jax.jit together with its consumer so
# the tiny transpose / pad / split ops fuse away (matters at small batch
# where the call is launch-latency bound).
# --------------------------------------------------------------------------
def ppo_actor_forward(x, packed):
    batch = x.shape[0]
    b_pad = _round_up(batch, 8)
    block_b = _choose_block_b(b_pad, _num_tensorcores())
    grid = (pl.cdiv(b_pad, block_b),)

    xt = jnp.transpose(x).astype(jnp.float32)                # [16, batch]
    if b_pad != batch:
        xt = jnp.pad(xt, ((0, 0), (0, b_pad - batch)))

    flops = 2 * b_pad * (
        STATE_DIM * SHARED_HIDDEN[0]
        + SHARED_HIDDEN[0] * SHARED_HIDDEN[1]
        + TRUNK_OUT * HEADS_HIDDEN
        + HEADS_HIDDEN * OUT_WIDTH
    )
    cost = pl.CostEstimate(
        flops=flops,
        transcendentals=b_pad * OUT_WIDTH,                   # one tanh / elem
        bytes_accessed=4 * (xt.size + PACK_ROWS * PACK_COLS + b_pad * OUT_WIDTH),
    )

    out = pl.pallas_call(
        ppo_actor_kernel,
        out_shape=jax.ShapeDtypeStruct((OUT_WIDTH, b_pad), jnp.float32),
        grid=grid,
        in_specs=[
            pl.BlockSpec((STATE_DIM, block_b), lambda i: (0, i)),
            # Constant index_map -> the packed params are fetched once and
            # stay VMEM-resident across grid steps.  (pl.Buffered(1) would
            # drop the redundant second buffer, but it is only ~70 KiB, so we
            # keep the default double-buffering for lowering robustness.)
            pl.BlockSpec((PACK_ROWS, PACK_COLS), lambda i: (0, 0)),
        ],
        out_specs=pl.BlockSpec((OUT_WIDTH, block_b), lambda i: (0, i)),
        compiler_params=pltpu.CompilerParams(
            dimension_semantics=("parallel",),
        ),
        cost_estimate=cost,
    )(xt, packed)                                            # [8, b_pad]

    out = out[:, :batch]
    mean = jnp.transpose(out[:ACTION_DIM, :])                # [batch, 4]
    var = jnp.transpose(out[ACTION_DIM:, :])                 # [batch, 4]
    return mean, var


# --------------------------------------------------------------------------
# Deterministic parameter init (uniform(-1/sqrt(fan_in), 1/sqrt(fan_in)),
# matching torch.nn.Linear's default init scheme, fixed PRNG key).
# Weights kept as (in, out) so the pure-JAX reference stays x @ W + b.
# --------------------------------------------------------------------------
def init_linear(key, fan_in, fan_out):
    kw, kb = jax.random.split(key)
    bound = 1.0 / jnp.sqrt(jnp.asarray(fan_in, jnp.float32))
    w = jax.random.uniform(kw, (fan_in, fan_out), jnp.float32, -bound, bound)
    b = jax.random.uniform(kb, (1, fan_out), jnp.float32, -bound, bound)
    return w, b


def init_params(key):
    dims = []
    in_dim = STATE_DIM
    for h in SHARED_HIDDEN:                 # shared trunk
        dims.append((in_dim, h))
        in_dim = h
    trunk_out = in_dim
    in_dim = trunk_out
    for h in MEAN_HIDDEN:                   # mean head hidden + output
        dims.append((in_dim, h))
        in_dim = h
    dims.append((in_dim, ACTION_DIM))
    in_dim = trunk_out
    for h in VAR_HIDDEN:                    # var head hidden + output
        dims.append((in_dim, h))
        in_dim = h
    dims.append((in_dim, ACTION_DIM))

    params = []
    keys = jax.random.split(key, len(dims))
    for k, (fi, fo) in zip(keys, dims):
        params.append(init_linear(k, fi, fo))
    return params


# --------------------------------------------------------------------------
# Pure-JAX reference (unfused, original layer structure) for sanity checking.
# --------------------------------------------------------------------------
def ppo_actor_ref(x, params):
    (ws0, bs0), (ws1, bs1), (wm0, bm0), (wm1, bm1), (wv0, bv0), (wv1, bv1) = params
    h = jnp.maximum(x @ ws0 + bs0, 0.0)
    h = jnp.maximum(h @ ws1 + bs1, 0.0)
    m = jnp.maximum(h @ wm0 + bm0, 0.0)
    m = jnp.tanh(m @ wm1 + bm1)
    v = jnp.maximum(h @ wv0 + bv0, 0.0)
    v = jax.nn.sigmoid(v @ wv1 + bv1)
    return m, v


if __name__ == "__main__":
    key = jax.random.PRNGKey(0)
    key_x, key_p = jax.random.split(key)

    x = jax.random.normal(key_x, (BATCH, STATE_DIM), jnp.float32)
    params = init_params(key_p)
    packed = jax.block_until_ready(pack_params(params))     # init-time packing

    fwd = jax.jit(ppo_actor_forward)
    mean, var = fwd(x, packed)
    mean = jax.block_until_ready(mean)
    var = jax.block_until_ready(var)

    mean_ref, var_ref = ppo_actor_ref(x, params)
    assert mean.shape == (BATCH, ACTION_DIM) and var.shape == (BATCH, ACTION_DIM)
    assert jnp.allclose(mean, mean_ref, atol=2e-5, rtol=2e-5)
    assert jnp.allclose(var, var_ref, atol=2e-5, rtol=2e-5)

    print("KERNEL_OK")
</pallas_src>

<mosaic_0001>
module attributes {stable_mosaic.version = 11 : i64} {
  func.func @ppo_actor_kernel(%arg0: i32, %arg1: memref<16x8xf32, #tpu.memory_space<vmem>>, %arg2: memref<272x64xf32, #tpu.memory_space<vmem>>, %arg3: memref<8x8xf32, #tpu.memory_space<vmem>>) attributes {dimension_semantics = [#tpu.dimension_semantics<parallel>], iteration_bounds = array<i64: 1>, scalar_prefetch = 0 : i64, scratch_operands = 0 : i64, tpu.core_type = #tpu.core_type<tc>, window_params = [{transform_indices = @transform_0, window_bounds = array<i64: 16, 8>}, {pipeline_mode = #tpu.pipeline_mode<synchronous>, transform_indices = @transform_1, window_bounds = array<i64: 272, 64>}, {transform_indices = @transform_2, window_bounds = array<i64: 8, 8>}]} {
    %c0 = arith.constant 0 : index
    %c0_0 = arith.constant 0 : index
    %0 = vector.load %arg1[%c0, %c0_0] : memref<16x8xf32, #tpu.memory_space<vmem>>, vector<16x8xf32>
    %c0_1 = arith.constant 0 : index
    %c0_2 = arith.constant 0 : index
    %1 = vector.load %arg2[%c0_1, %c0_2] : memref<272x64xf32, #tpu.memory_space<vmem>>, vector<32x16xf32>
    %c32 = arith.constant 32 : index
    %c0_3 = arith.constant 0 : index
    %2 = vector.load %arg2[%c32, %c0_3] : memref<272x64xf32, #tpu.memory_space<vmem>>, vector<32x32xf32>
    %c64 = arith.constant 64 : index
    %c0_4 = arith.constant 0 : index
    %3 = vector.load %arg2[%c64, %c0_4] : memref<272x64xf32, #tpu.memory_space<vmem>>, vector<64x32xf32>
    %c128 = arith.constant 128 : index
    %c0_5 = arith.constant 0 : index
    %4 = vector.load %arg2[%c128, %c0_5] : memref<272x64xf32, #tpu.memory_space<vmem>>, vector<8x64xf32>
    %c136 = arith.constant 136 : index
    %c0_6 = arith.constant 0 : index
    %5 = vector.load %arg2[%c136, %c0_6] : memref<272x64xf32, #tpu.memory_space<vmem>>, vector<32x1xf32>
    %c168 = arith.constant 168 : index
    %c0_7 = arith.constant 0 : index
    %6 = vector.load %arg2[%c168, %c0_7] : memref<272x64xf32, #tpu.memory_space<vmem>>, vector<32x1xf32>
    %c200 = arith.constant 200 : index
    %c0_8 = arith.constant 0 : index
    %7 = vector.load %arg2[%c200, %c0_8] : memref<272x64xf32, #tpu.memory_space<vmem>>, vector<64x1xf32>
    %c264 = arith.constant 264 : index
    %c0_9 = arith.constant 0 : index
    %8 = vector.load %arg2[%c264, %c0_9] : memref<272x64xf32, #tpu.memory_space<vmem>>, vector<8x1xf32>
    %cst = arith.constant dense<0.000000e+00> : vector<32x8xf32>
    %9 = tpu.matmul %1, %0, %cst {dimension_numbers = #tpu.dot_dimension_numbers<[1], [0], [0], [1], [0, 0, 1, 1], [], []>} : vector<32x16xf32>, vector<16x8xf32>, vector<32x8xf32> -> vector<32x8xf32>
    %10 = vector.broadcast %5 : vector<32x1xf32> to vector<32x8xf32>
    %11 = arith.addf %9, %10 : vector<32x8xf32>
    %cst_10 = arith.constant 0.000000e+00 : f32
    %12 = vector.broadcast %cst_10 : f32 to vector<32x8xf32>
    %13 = arith.maximumf %11, %12 : vector<32x8xf32>
    %cst_11 = arith.constant dense<0.000000e+00> : vector<32x8xf32>
    %14 = tpu.matmul %2, %13, %cst_11 {dimension_numbers = #tpu.dot_dimension_numbers<[1], [0], [0], [1], [0, 0, 1, 1], [], []>} : vector<32x32xf32>, vector<32x8xf32>, vector<32x8xf32> -> vector<32x8xf32>
    %15 = vector.broadcast %6 : vector<32x1xf32> to vector<32x8xf32>
    %16 = arith.addf %14, %15 : vector<32x8xf32>
    %cst_12 = arith.constant 0.000000e+00 : f32
    %17 = vector.broadcast %cst_12 : f32 to vector<32x8xf32>
    %18 = arith.maximumf %16, %17 : vector<32x8xf32>
    %cst_13 = arith.constant dense<0.000000e+00> : vector<64x8xf32>
    %19 = tpu.matmul %3, %18, %cst_13 {dimension_numbers = #tpu.dot_dimension_numbers<[1], [0], [0], [1], [0, 0, 1, 1], [], []>} : vector<64x32xf32>, vector<32x8xf32>, vector<64x8xf32> -> vector<64x8xf32>
    %20 = vector.broadcast %7 : vector<64x1xf32> to vector<64x8xf32>
    %21 = arith.addf %19, %20 : vector<64x8xf32>
    %cst_14 = arith.constant 0.000000e+00 : f32
    %22 = vector.broadcast %cst_14 : f32 to vector<64x8xf32>
    %23 = arith.maximumf %21, %22 : vector<64x8xf32>
    %cst_15 = arith.constant dense<0.000000e+00> : vector<8x8xf32>
    %24 = tpu.matmul %4, %23, %cst_15 {dimension_numbers = #tpu.dot_dimension_numbers<[1], [0], [0], [1], [0, 0, 1, 1], [], []>} : vector<8x64xf32>, vector<64x8xf32>, vector<8x8xf32> -> vector<8x8xf32>
    %25 = vector.broadcast %8 : vector<8x1xf32> to vector<8x8xf32>
    %26 = arith.addf %24, %25 : vector<8x8xf32>
    %27 = tpu.iota {dimensions = array<i32: 0>} : vector<8x8xi32>
    %c4_i32 = arith.constant 4 : i32
    %28 = vector.broadcast %c4_i32 : i32 to vector<8x8xi32>
    %29 = arith.cmpi slt, %27, %28 : vector<8x8xi32>
    %cst_16 = arith.constant 5.000000e-01 : f32
    %30 = vector.broadcast %cst_16 : f32 to vector<8x8xf32>
    %31 = arith.mulf %30, %26 : vector<8x8xf32>
    %32 = arith.select %29, %26, %31 : vector<8x8xi1>, vector<8x8xf32>
    %33 = math.tanh %32 : vector<8x8xf32>
    %cst_17 = arith.constant 5.000000e-01 : f32
    %34 = vector.broadcast %cst_17 : f32 to vector<8x8xf32>
    %35 = arith.mulf %34, %33 : vector<8x8xf32>
    %cst_18 = arith.constant 5.000000e-01 : f32
    %36 = vector.broadcast %cst_18 : f32 to vector<8x8xf32>
    %37 = arith.addf %35, %36 : vector<8x8xf32>
    %38 = arith.select %29, %33, %37 : vector<8x8xi1>, vector<8x8xf32>
    %c0_19 = arith.constant 0 : index
    %c0_20 = arith.constant 0 : index
    %39 = vector.load %arg3[%c0_19, %c0_20] : memref<8x8xf32, #tpu.memory_space<vmem>>, vector<8x8xf32>
    tpu.vector_store %arg3[%c0_19, %c0_20], %38 {strides = array<i32>} : memref<8x8xf32, #tpu.memory_space<vmem>>, vector<8x8xf32>,
    return
  }
  func.func @transform_0(%arg0: i32) -> (i32, i32) {
    %c0_i32 = arith.constant 0 : i32
    %c0_i32_0 = arith.constant 0 : i32
    return %c0_i32, %arg0 : i32, i32
  }
  func.func @transform_1(%arg0: i32) -> (i32, i32) {
    %c0_i32 = arith.constant 0 : i32
    %c0_i32_0 = arith.constant 0 : i32
    %c0_i32_1 = arith.constant 0 : i32
    return %c0_i32, %c0_i32_0 : i32, i32
  }
  func.func @transform_2(%arg0: i32) -> (i32, i32) {
    %c0_i32 = arith.constant 0 : i32
    %c0_i32_0 = arith.constant 0 : i32
    return %c0_i32, %arg0 : i32, i32
  }
}

</mosaic_0001>

<bundles_post_ra>
// kernel: ppo_actor_forward.1
= control target key start
LH: loop header
LB: loop body
LE: loop exit
PB: predicated region body
PF: predicated region fallthrough
CT: control target
= control target key end

     0   :  { %v363_v0 = vmov 0   ;;  %vm67_vm0 = vcmask 130048   ;;  %vm133_vm1 = vcmask 261120   ;;  %vm297_vm2 = vcmask 523264   ;;  %s506_s1 = inlined_call_operand.vmem [shape: f32[272,64], index: 1, kind: input, shape index: {}]   ;;  %s507_s0 = inlined_call_operand.vmem [shape: f32[16,8], index: 0, kind: input, shape index: {}]   ;;  %s508_s2 = inlined_call_operand.vmem [shape: f32[8,8], index: 2, kind: output, shape index: {}]  }
   0x1   :  { %359 = vset.pattern.permute.xlu1 %v363_v0  ;;  %358 = vset.pattern.permute.xlu0 %v363_v0  ;;  %v33_v1 = vld [vmem:[%s506_s1 + $0xa0] sm:$0xff]  ;;  %v31_v2 = vld [vmem:[%s506_s1 + $0x90] sm:$0xff]  ;;  %v12_v3 = vld [vmem:[%s507_s0 + $0x8] sm:$0xff]  ;;  %vm330_vm4 = vcmask 64512  }
   0x2   :  { %64 = vperm.xlu0 %358, %v33_v1   ;;  %54 = vperm.xlu1 %359, %v31_v2   ;;  %v11_v4 = vld [vmem:[%s507_s0] sm:$0xff]  ;;  %v32_v6 = vld [vmem:[%s506_s1 + $0x98] sm:$0xff]  ;;  %v30_v7 = vld [vmem:[%s506_s1 + $0x88] sm:$0xff] }
   0x3   :  { %94 = vmatpush.msra.mxu0 %v12_v3  ;;  %v13_v5 = vld [vmem:[%s506_s1] sm:$0xff]  ;;  %360 = vset.pattern.permute.xlu2 %v363_v0  ;;  %v14_v8 = vld [vmem:[%s506_s1 + $0x8] sm:$0xff]  ;;  %v35_v9 = vld [vmem:[%s506_s1 + $0xb0] sm:$0xff] }
   0x4   :  { %v34_v10 = vld [vmem:[%s506_s1 + $0xa8] sm:$0xff]  ;;  %v15_v11 = vld [vmem:[%s506_s1 + $0x10] sm:$0xff]  ;;  %v44_v12 = vld [vmem:[%s506_s1 + $0xf8] sm:$0xff] }
   0x5   :  { %95 = vmatpush.msra.mxu0 %v11_v4  ;;  %v43_v13 = vld [vmem:[%s506_s1 + $0xf0] sm:$0xff]  ;;  %v16_v14 = vld [vmem:[%s506_s1 + $0x18] sm:$0xff]  ;;  %v41_v15 = vld [vmem:[%s506_s1 + $0xe0] sm:$0xff] }
   0x6   :  { %336 = vmatmul.msk.f32.vlgmr.msra.gmra.mxu0 %vm67_vm0, %v13_v5  ;;  %v40_v16 = vld [vmem:[%s506_s1 + $0xd8] sm:$0xff]  ;;  %v38_v17 = vld [vmem:[%s506_s1 + $0xc8] sm:$0xff]  ;;  %v37_v24 = vld [vmem:[%s506_s1 + $0xc0] sm:$0xff] }
   0x7   :  { %v46_v18 = vld [vmem:[%s506_s1 + $0x108] sm:$0xff]  ;;  %130 = vperm.xlu2 %360, %v37_v24   ;;  %v36_v32 = vld [vmem:[%s506_s1 + $0xb8] sm:$0xff]  ;;  %v17_v37 = vld [vmem:[%s506_s1 + $0x20] sm:$0xff] }
   0x8   :  { %v45_v38 = vld [vmem:[%s506_s1 + $0x100] sm:$0xff]  ;;  %v18_v39 = vld [vmem:[%s506_s1 + $0x28] sm:$0xff]  ;;  %v19_v41 = vld [vmem:[%s506_s1 + $0x30] sm:$0xff] }
   0x9   :  { %v42_v40 = vld [vmem:[%s506_s1 + $0xe8] sm:$0xff]  ;;  %v39_v42 = vld [vmem:[%s506_s1 + $0xd0] sm:$0xff]  ;;  %v20_v43 = vld [vmem:[%s506_s1 + $0x38] sm:$0xff] }
   0xa   :  { %59 = vperm.xlu0 %358, %v32_v6   ;;  %49 = vperm.xlu1 %359, %v30_v7   ;;  %v21_v60 = vld [vmem:[%s506_s1 + $0x40] sm:$0xff]  ;;  %v26_v61 = vld [vmem:[%s506_s1 + $0x68] sm:$0xff]  ;;  %v27_v63 = vld [vmem:[%s506_s1 + $0x70] sm:$0xff] }
   0xb   :  { %v22_v62 = vld [vmem:[%s506_s1 + $0x48] sm:$0xff]  ;;  %v23_v0 = vld [vmem:[%s506_s1 + $0x50] sm:$0xff]  ;;  %v28_v1 = vld [vmem:[%s506_s1 + $0x78] sm:$0xff] }
   0xc   :  { %v24_v2 = vld [vmem:[%s506_s1 + $0x58] sm:$0xff]  ;;  %v25_v3 = vld [vmem:[%s506_s1 + $0x60] sm:$0xff] }
   0xe   :  { %337 = vmatmul.msk.f32.gmra.mxu0 %vm67_vm0, %v14_v8 }
   0xf   :  { %125 = vperm.xlu2 %360, %v36_v32  }
  0x12   :  { %120 = vperm.xlu0 %358, %v35_v9   ;;  %115 = vperm.xlu1 %359, %v34_v10  }
  0x16   :  { %338 = vmatmul.msk.f32.gmra.mxu0 %vm67_vm0, %v15_v11 }
  0x17   :  { %216 = vperm.xlu2 %360, %v45_v38  }
  0x1a   :  { %211 = vperm.xlu0 %358, %v44_v12   ;;  %206 = vperm.xlu1 %359, %v43_v13  }
  0x1e   :  { %339 = vmatmul.msk.f32.gmra.mxu0 %vm67_vm0, %v16_v14 }
  0x1f   :  { %201 = vperm.xlu2 %360, %v42_v40  }
  0x22   :  { %196 = vperm.xlu0 %358, %v41_v15   ;;  %191 = vperm.xlu1 %359, %v40_v16  }
  0x27   :  { %186 = vperm.xlu2 %360, %v39_v42  }
  0x2a   :  { %181 = vperm.xlu0 %358, %v38_v17   ;;  %294 = vperm.xlu1 %359, %v46_v18  }
  0x61   :  { %v131_v46 = vpop.permute.xlu2 %130 }
  0x69   :  { %v126_v48 = vpop.permute.xlu2 %125 }
  0x71   :  { %v217_v9 = vpop.permute.xlu2 %216 }
  0x74   :  { %v65_v21 = vpop.permute.xlu0 %64  ;;  %v55_v23 = vpop.permute.xlu1 %54 }
  0x7c   :  { %v60_v25 = vpop.permute.xlu0 %59  ;;  %v50_v31 = vpop.permute.xlu1 %49 }
  0x83   :  { %v97_v19 = vpop.f32.mrf.mxu0 }
  0x84   :  { %v98_v33 = vadd.f32 %v97_v19, %v50_v31  ;;  %v121_v52 = vpop.permute.xlu0 %120  ;;  %v116_v55 = vpop.permute.xlu1 %115 }
  0x86   :  { %v109_v36 = vmax.f32 %v98_v33, 0.0 }
  0x8b   :  { %v100_v20 = vpop.f32.mrf.mxu0 }
  0x8c   :  { %v101_v29 = vadd.f32 %v100_v20, %v55_v23  ;;  %v212_v8 = vpop.permute.xlu0 %211  ;;  %v207_v14 = vpop.permute.xlu1 %206 }
  0x8d   :  { %v202_v20 = vpop.permute.xlu2 %201 }
  0x8e   :  { %v110_v35 = vmax.f32 %v101_v29, 0.0 }
  0x93   :  { %v103_v22 = vpop.f32.mrf.mxu0 }
  0x94   :  { %v104_v27 = vadd.f32 %v103_v22, %v60_v25  ;;  %v192_v25 = vpop.permute.xlu1 %191 }
  0x96   :  { %v111_v34 = vmax.f32 %v104_v27, 0.0 }
  0x9b   :  { %v106_v26 = vpop.f32.mrf.mxu0 }
  0x9c   :  { %v107_v28 = vadd.f32 %v106_v26, %v65_v21  ;;  %v197_v21 = vpop.permute.xlu0 %196 }
  0x9e   :  { %v112_v30 = vmax.f32 %v107_v28, 0.0  ;;  %v187_v28 = vpop.permute.xlu2 %186 }
  0xa0   :  { %158 = vmatpush.msra.mxu1 %v112_v30 }
  0xa2   :  { %159 = vmatpush.msra.mxu1 %v111_v34 }
  0xa4   :  { %160 = vmatpush.msra.mxu1 %v110_v35  ;;  %v182_v31 = vpop.permute.xlu0 %181 }
  0xa6   :  { %161 = vmatpush.msra.mxu1 %v109_v36  ;;  %v29_v36 = vld [vmem:[%s506_s1 + $0x80] sm:$0xff] }
  0xa7   :  { %340 = vmatmul.msk.f32.vlgmr.msra.gmra.mxu1 %vm133_vm1, %v17_v37  ;;  %v321_v37 = vlaneseq }
  0xa9   :  { %v322_v38 = vshrl.u32 %v321_v37, 7 }
  0xab   :  { %vm323_vm3 = vcmp.lt.s32.totalorder %v322_v38, 4 }
  0xaf   :  { %341 = vmatmul.msk.f32.gmra.mxu1 %vm133_vm1, %v18_v39  ;;  %v295_v39 = vpop.permute.xlu1 %294 }
  0xb7   :  { %342 = vmatmul.msk.f32.gmra.mxu1 %vm133_vm1, %v19_v41 }
  0xbf   :  { %343 = vmatmul.msk.f32.gmra.mxu1 %vm133_vm1, %v20_v43 }
 0x124   :  { %v163_v44 = vpop.f32.mrf.mxu1 }
 0x125   :  { %v164_v56 = vadd.f32 %v163_v44, %v116_v55 }
 0x127   :  { %v175_v59 = vmax.f32 %v164_v56, 0.0 }
 0x12c   :  { %v166_v45 = vpop.f32.mrf.mxu1 }
 0x12d   :  { %v167_v53 = vadd.f32 %v166_v45, %v121_v52 }
 0x12f   :  { %v176_v58 = vmax.f32 %v167_v53, 0.0 }
 0x134   :  { %v169_v47 = vpop.f32.mrf.mxu1 }
 0x135   :  { %v170_v50 = vadd.f32 %v169_v47, %v126_v48 }
 0x137   :  { %v177_v57 = vmax.f32 %v170_v50, 0.0 }
 0x13c   :  { %v172_v49 = vpop.f32.mrf.mxu1 }
 0x13d   :  { %v173_v51 = vadd.f32 %v172_v49, %v131_v46 }
 0x13f   :  { %v178_v54 = vmax.f32 %v173_v51, 0.0 }
 0x141   :  { %255 = vmatpush.msra.mxu2 %v178_v54  ;;  %353 = vmatpush.msra.mxu3 %v178_v54 }
 0x143   :  { %256 = vmatpush.msra.mxu2 %v177_v57  ;;  %354 = vmatpush.msra.mxu3 %v177_v57 }
 0x145   :  { %257 = vmatpush.msra.mxu2 %v176_v58  ;;  %355 = vmatpush.msra.mxu3 %v176_v58 }
 0x147   :  { %258 = vmatpush.msra.mxu2 %v175_v59  ;;  %356 = vmatpush.msra.mxu3 %v175_v59 }
 0x148   :  { %344 = vmatmul.msk.f32.vlgmr.msra.gmra.mxu2 %vm133_vm1, %v21_v60  ;;  %349 = vmatmul.msk.f32.vlgmr.msra.gmra.mxu3 %vm133_vm1, %v26_v61 }
 0x150   :  { %345 = vmatmul.msk.f32.gmra.mxu2 %vm133_vm1, %v22_v62  ;;  %350 = vmatmul.msk.f32.gmra.mxu3 %vm133_vm1, %v27_v63 }
 0x158   :  { %346 = vmatmul.msk.f32.gmra.mxu2 %vm133_vm1, %v23_v0  ;;  %351 = vmatmul.msk.f32.gmra.mxu3 %vm133_vm1, %v28_v1 }
 0x160   :  { %347 = vmatmul.msk.f32.gmra.mxu2 %vm133_vm1, %v24_v2 }
 0x168   :  { %348 = vmatmul.msk.f32.gmra.mxu2 %vm133_vm1, %v25_v3 }
 0x1cb   :  { %v260_v4 = vpop.f32.mrf.mxu2  ;;  %v275_v5 = vpop.f32.mrf.mxu3 }
 0x1cc   :  { %v276_v15 = vadd.f32 %v275_v5, %v207_v14  ;;  %v261_v32 = vadd.f32 %v260_v4, %v182_v31 }
 0x1ce   :  { %v289_v18 = vmax.f32 %v276_v15, 0.0  ;;  %v284_v35 = vmax.f32 %v261_v32, 0.0 }
 0x1d3   :  { %v263_v6 = vpop.f32.mrf.mxu2  ;;  %v278_v7 = vpop.f32.mrf.mxu3 }
 0x1d4   :  { %v279_v12 = vadd.f32 %v278_v7, %v212_v8  ;;  %v264_v29 = vadd.f32 %v263_v6, %v187_v28 }
 0x1d6   :  { %v290_v17 = vmax.f32 %v279_v12, 0.0  ;;  %v285_v34 = vmax.f32 %v264_v29, 0.0 }
 0x1db   :  { %v266_v10 = vpop.f32.mrf.mxu2  ;;  %v281_v11 = vpop.f32.mrf.mxu3 }
 0x1dc   :  { %v282_v13 = vadd.f32 %v281_v11, %v217_v9  ;;  %v267_v26 = vadd.f32 %v266_v10, %v192_v25 }
 0x1de   :  { %v291_v16 = vmax.f32 %v282_v13, 0.0  ;;  %v286_v33 = vmax.f32 %v267_v26, 0.0 }
 0x1e0   :  { %309 = vmatpush.msrb.mxu3 %v291_v16 }
 0x1e2   :  { %310 = vmatpush.msrb.mxu3 %v290_v17 }
 0x1e3   :  { %v269_v19 = vpop.f32.mrf.mxu2 }
 0x1e4   :  { %311 = vmatpush.msrb.mxu3 %v289_v18  ;;  %v270_v23 = vadd.f32 %v269_v19, %v197_v21 }
 0x1e6   :  { %v287_v30 = vmax.f32 %v270_v23, 0.0 }
 0x1eb   :  { %v272_v22 = vpop.f32.mrf.mxu2 }
 0x1ec   :  { %v273_v24 = vadd.f32 %v272_v22, %v202_v20 }
 0x1ee   :  { %v288_v27 = vmax.f32 %v273_v24, 0.0 }
 0x1f0   :  { %312 = vmatpush.msrb.mxu3 %v288_v27 }
 0x1f2   :  { %313 = vmatpush.msrb.mxu3 %v287_v30 }
 0x1f4   :  { %314 = vmatpush.msrb.mxu3 %v286_v33 }
 0x1f6   :  { %315 = vmatpush.msrb.mxu3 %v285_v34 }
 0x1f8   :  { %316 = vmatpush.msrb.mxu3 %v284_v35 }
 0x1f9   :  { %352 = vmatmul.msk.f32.vlgmr.msrb.gmra.mxu3 %vm297_vm2, %v29_v36 }
 0x27c   :  { %v318_v40 = vpop.f32.mrf.mxu3 }
 0x27d   :  { %v319_v41 = vadd.f32 %v318_v40, %v295_v39 }
 0x27f   :  { %v324_v42 = vmul.f32 0.5, %v319_v41 }
 0x281   :  { %v325_v43 = vsel %vm323_vm3, %v319_v41, %v324_v42 }
 0x282   :  { %361 = vtanh.f32 %v325_v43 }
 0x288   :  { %v362_v44 = vpop.eup %361 }
 0x289   :  { %v327_v45 = vmul.f32 0.5, %v362_v44 }
 0x28b   :  { %v328_v46 = vadd.f32 0.5, %v327_v45 }
 0x28d   :  { %v329_v47 = vsel %vm323_vm3, %v362_v44, %v328_v46 }
 0x28e   :  { %331 = vst.msk [vmem:[%s508_s2] sm:$0xff] %vm330_vm4, %v329_v47 }

</bundles_post_ra>
